<compile_context>
chip_gen: v6e
topology: v6e:2x2x1
jax: 0.10.0
libtpu: 0.0.40
codegen_flags: <defaults>
</compile_context>

<pallas_src>
import math
import functools

import numpy as np
import jax
import jax.numpy as jnp
from jax import lax
from jax.experimental import pallas as pl
from jax.experimental.pallas import tpu as pltpu


def _mha_kernel(q_ref, k_ref, v_ref,
                wq_ref, bq_ref, wk_ref, bk_ref, wv_ref, bv_ref, wo_ref, bo_ref,
                o_ref, acc_ref, *, num_heads, approx_recip):
    """Fused MHA for one block of batch elements.

    Refs (all VMEM):
      q_ref: (Bt, T_q, D)   k_ref/v_ref: (Bt, T_k, D)
      wq/wk/wv: (H, D, d_k) compute dtype (scale folded into wq); wo: (H, d_k, D)
      bq/bk/bv: (H, 1, d_k) f32 (scale folded into bq); bo: (1, D) f32
      o_ref: (Bt, T_q, D);  acc_ref: (Bt*T_q, D) f32 scratch
    """
    Bt, T_q, D = q_ref.shape
    _, T_k, _ = k_ref.shape
    cd = wq_ref.dtype  # MXU compute dtype (bf16 by default, f32 on the strict path)

    # Cast the activation block once per grid step (leading-dim fold only; no relayout).
    q2 = q_ref[...].reshape(Bt * T_q, D).astype(cd)
    k2 = k_ref[...].reshape(Bt * T_k, D).astype(cd)
    v2 = v_ref[...].reshape(Bt * T_k, D).astype(cd)

    acc_ref[...] = jnp.zeros_like(acc_ref)

    def head_body(h, carry):
        # Per-head projections: the head split lives in the resident weight stacks, indexed
        # on the *leading* dim -> no lane-dim slicing anywhere.  K=D is full-width on the
        # MXU; the 1/sqrt(d_k) scale is already folded into wq/bq.
        qh = jnp.dot(q2, wq_ref[h], preferred_element_type=jnp.float32) + bq_ref[h]
        kh = jnp.dot(k2, wk_ref[h], preferred_element_type=jnp.float32) + bk_ref[h]
        vh = jnp.dot(v2, wv_ref[h], preferred_element_type=jnp.float32) + bv_ref[h]

        d_k = qh.shape[-1]
        qh3 = qh.reshape(Bt, T_q, d_k).astype(cd)
        kh3 = kh.reshape(Bt, T_k, d_k).astype(cd)
        vh3 = vh.reshape(Bt, T_k, d_k).astype(cd)

        # Scores: NT contraction over d_k, batched over the batch block (no transposes).
        s = jnp.einsum('bqd,bkd->bqk', qh3, kh3,
                       preferred_element_type=jnp.float32)       # (Bt, T_q, T_k) f32
        s = s - jnp.max(s, axis=-1, keepdims=True)
        e = jnp.exp(s)
        denom = jnp.sum(e, axis=-1, keepdims=True)
        if approx_recip:
            attn = (e * pl.reciprocal(denom, approx=True)).astype(cd)
        else:
            attn = (e / denom).astype(cd)                         # exact divide on fp32 path

        ctx = jnp.einsum('bqk,bkd->bqd', attn, vh3,
                         preferred_element_type=jnp.float32)      # (Bt, T_q, d_k) f32

        # Folded "concat heads + @ Wo^T": acc += ctx_h @ Wo_h  (Wo_h pre-sliced in wrapper).
        acc_ref[...] += jnp.dot(ctx.reshape(Bt * T_q, d_k).astype(cd), wo_ref[h],
                                preferred_element_type=jnp.float32)
        return carry

    lax.fori_loop(0, num_heads, head_body, 0)

    out = acc_ref[...] + bo_ref[...]
    o_ref[...] = out.reshape(Bt, T_q, D).astype(o_ref.dtype)


def _vmem_capacity_bytes():
    try:
        return int(pltpu.get_tpu_info().vmem_capacity_bytes)
    except Exception:
        return 64 * 1024 * 1024  # conservative fallback (v7x per-TensorCore VMEM)


def _per_row_vmem_bytes(T_q, T_k, D, d_k, in_b, out_b, cd_b):
    """Approximate VMEM bytes needed per batch row in one grid step."""
    io = 2 * ((T_q + 2 * T_k) * D * in_b + T_q * D * out_b)   # double-buffered q/k/v in + o out
    act = (T_q + 2 * T_k) * D * cd_b                          # q2/k2/v2 cast copies (live across heads)
    head = (T_q + 2 * T_k) * d_k * (4 + cd_b)                 # one head's qh/kh/vh (f32 + cast)
    scores = T_q * T_k * (2 * 4 + cd_b)                       # s, e (f32) + attn (cast)
    ctx = T_q * d_k * (4 + cd_b)
    acc = T_q * D * 4                                         # f32 accumulator scratch
    return io + act + head + scores + ctx + acc


def _pick_block_b(B, per_row, resident, vmem_limit):
    budget = vmem_limit - resident - (4 << 20)                # slack for compiler scratch
    cap = max(1, budget // max(per_row, 1))
    divisors = [d for d in range(1, B + 1) if B % d == 0]
    # Keep the grid long enough for the software pipeline to overlap DMA with compute and
    # for v7x's two TensorCores to both get work; prefer an even number of grid steps.
    for min_steps in (4, 2, 1):
        cands = [d for d in divisors if d <= cap and B // d >= min(min_steps, B)]
        if cands:
            even = [d for d in cands if (B // d) % 2 == 0]
            return max(even) if even else max(cands)
    return 1


def _resident_spec(shape, single_buffer):
    idx = lambda b: (0,) * len(shape)
    if single_buffer:
        try:
            # Constant index map -> the block never changes; one VMEM buffer is enough
            # (default pipelining would waste a second copy of every weight).
            return pl.BlockSpec(shape, idx, pipeline_mode=pl.Buffered(1))
        except (TypeError, AttributeError):
            pass
    return pl.BlockSpec(shape, idx)


def multi_head_attention(q, k, v, params, num_heads, *,
                         compute_dtype=jnp.bfloat16, block_b=None):
    """params = (wq, bq, wk, bk, wv, bv, wo, bo); weights PyTorch-style (out, in), biases (D,)."""
    B, T_q, D = q.shape
    _, T_k, _ = k.shape
    assert D % num_heads == 0
    d_k = D // num_heads
    wq, bq, wk, bk, wv, bv, wo, bo = params
    cd = compute_dtype
    scale = 1.0 / math.sqrt(d_k)

    # One-time static layout work (all on weights, nothing per token).
    def split_in_proj(w, b, s=1.0):
        w_t = (w.T * s).astype(cd)                                    # (D_in, D_out)
        w_h = w_t.reshape(D, num_heads, d_k).transpose(1, 0, 2)       # (H, D, d_k)
        b_h = (b * s).astype(jnp.float32).reshape(num_heads, 1, d_k)  # (H, 1, d_k)
        return w_h, b_h

    wq_h, bq_h = split_in_proj(wq, bq, scale)   # scale folded into Q weight + bias
    wk_h, bk_h = split_in_proj(wk, bk)
    wv_h, bv_h = split_in_proj(wv, bv)
    wo_h = wo.T.astype(cd).reshape(num_heads, d_k, D)                 # (H, d_k, D)
    bo2 = bo.astype(jnp.float32).reshape(1, D)

    cd_b = np.dtype(cd).itemsize
    in_b = q.dtype.itemsize
    vmem_cap = _vmem_capacity_bytes()
    vmem_limit = (vmem_cap * 3) // 4     # ~96 MiB on v5e/v6e (128 MiB), ~48 MiB on v7x (64 MiB)
    resident = 4 * D * D * cd_b + 4 * D * 4
    per_row = _per_row_vmem_bytes(T_q, T_k, D, d_k, in_b, in_b, cd_b)
    if block_b is None:
        block_b = _pick_block_b(B, per_row, resident, vmem_limit)
    assert B % block_b == 0
    grid = (B // block_b,)

    kernel = functools.partial(
        _mha_kernel, num_heads=num_heads,
        approx_recip=(np.dtype(cd) != np.dtype(jnp.float32)))

    def build(single_buffer_weights):
        in_specs = [
            pl.BlockSpec((block_b, T_q, D), lambda b: (b, 0, 0)),
            pl.BlockSpec((block_b, T_k, D), lambda b: (b, 0, 0)),
            pl.BlockSpec((block_b, T_k, D), lambda b: (b, 0, 0)),
        ]
        for w_arr, b_arr in ((wq_h, bq_h), (wk_h, bk_h), (wv_h, bv_h)):
            in_specs.append(_resident_spec(w_arr.shape, single_buffer_weights))
            in_specs.append(_resident_spec(b_arr.shape, single_buffer_weights))
        in_specs.append(_resident_spec(wo_h.shape, single_buffer_weights))
        in_specs.append(_resident_spec(bo2.shape, single_buffer_weights))
        return pl.pallas_call(
            kernel,
            out_shape=jax.ShapeDtypeStruct((B, T_q, D), q.dtype),
            grid=grid,
            in_specs=in_specs,
            out_specs=pl.BlockSpec((block_b, T_q, D), lambda b: (b, 0, 0)),
            scratch_shapes=[pltpu.VMEM((block_b * T_q, D), jnp.float32)],
            compiler_params=pltpu.CompilerParams(
                dimension_semantics=("parallel",),
                vmem_limit_bytes=int(vmem_limit),
            ),
        )

    args = (q, k, v, wq_h, bq_h, wk_h, bk_h, wv_h, bv_h, wo_h, bo2)
    try:
        return build(True)(*args)
    except Exception:
        # Compatibility fallback: retry without the single-buffer pipeline hint.
        return build(False)(*args)


def _reference_mha(q, k, v, params, num_heads):
    """Pure-JAX reference mirroring the PyTorch forward."""
    wq, bq, wk, bk, wv, bv, wo, bo = params
    B, T_q, D = q.shape
    _, T_k, _ = k.shape
    d_k = D // num_heads
    qp = (q @ wq.T + bq).reshape(B, T_q, num_heads, d_k).transpose(0, 2, 1, 3)
    kp = (k @ wk.T + bk).reshape(B, T_k, num_heads, d_k).transpose(0, 2, 1, 3)
    vp = (v @ wv.T + bv).reshape(B, T_k, num_heads, d_k).transpose(0, 2, 1, 3)
    scores = qp @ kp.transpose(0, 1, 3, 2) / math.sqrt(d_k)
    attn = jax.nn.softmax(scores, axis=-1)
    ctx = (attn @ vp).transpose(0, 2, 1, 3).reshape(B, T_q, D)
    return ctx @ wo.T + bo


if __name__ == "__main__":
    B, T, d_model, num_heads = 2, 8, 32, 4

    key = jax.random.PRNGKey(0)
    keys = jax.random.split(key, 12)
    bound = 1.0 / math.sqrt(d_model)  # PyTorch Linear default init range

    def make_linear(kw, kb):
        w = jax.random.uniform(kw, (d_model, d_model), jnp.float32, -bound, bound)
        b = jax.random.uniform(kb, (d_model,), jnp.float32, -bound, bound)
        return w, b

    wq, bq = make_linear(keys[0], keys[1])
    wk, bk = make_linear(keys[2], keys[3])
    wv, bv = make_linear(keys[4], keys[5])
    wo, bo = make_linear(keys[6], keys[7])
    params = (wq, bq, wk, bk, wv, bv, wo, bo)

    q = jax.random.normal(keys[8], (B, T, d_model), jnp.float32)
    k = jax.random.normal(keys[9], (B, T, d_model), jnp.float32)
    v = jax.random.normal(keys[10], (B, T, d_model), jnp.float32)

    ref = _reference_mha(q, k, v, params, num_heads)

    # Default path: bf16 MXU operands, f32 accumulation, approx EUP reciprocal.
    out_bf16 = jax.block_until_ready(multi_head_attention(q, k, v, params, num_heads))
    assert out_bf16.shape == (B, T, d_model)
    assert jnp.allclose(out_bf16, ref, atol=5e-2, rtol=5e-2), \
        "Pallas MHA (bf16 matmuls) mismatch vs reference"

    # Strict fp32 path (exact softmax divide) for a tight numerical check.
    out_f32 = jax.block_until_ready(
        multi_head_attention(q, k, v, params, num_heads, compute_dtype=jnp.float32))
    assert jnp.allclose(out_f32, ref, atol=5e-3, rtol=5e-3), \
        "Pallas MHA (fp32 matmuls) mismatch vs reference"

    print("KERNEL_OK")
</pallas_src>

<mosaic_0001>
module attributes {stable_mosaic.version = 11 : i64} {
  func.func @_mha_kernel(%arg0: i32, %arg1: memref<1x8x32xf32, #tpu.memory_space<vmem>>, %arg2: memref<1x8x32xf32, #tpu.memory_space<vmem>>, %arg3: memref<1x8x32xf32, #tpu.memory_space<vmem>>, %arg4: memref<4x32x8xbf16, #tpu.memory_space<vmem>>, %arg5: memref<4x1x8xf32, #tpu.memory_space<vmem>>, %arg6: memref<4x32x8xbf16, #tpu.memory_space<vmem>>, %arg7: memref<4x1x8xf32, #tpu.memory_space<vmem>>, %arg8: memref<4x32x8xbf16, #tpu.memory_space<vmem>>, %arg9: memref<4x1x8xf32, #tpu.memory_space<vmem>>, %arg10: memref<4x8x32xbf16, #tpu.memory_space<vmem>>, %arg11: memref<1x32xf32, #tpu.memory_space<vmem>>, %arg12: memref<1x8x32xf32, #tpu.memory_space<vmem>>, %arg13: memref<8x32xf32, #tpu.memory_space<vmem>>) attributes {dimension_semantics = [#tpu.dimension_semantics<parallel>], iteration_bounds = array<i64: 2>, scalar_prefetch = 0 : i64, scratch_operands = 1 : i64, tpu.core_type = #tpu.core_type<tc>, window_params = [{transform_indices = @transform_0, window_bounds = array<i64: 1, 8, 32>}, {transform_indices = @transform_1, window_bounds = array<i64: 1, 8, 32>}, {transform_indices = @transform_2, window_bounds = array<i64: 1, 8, 32>}, {pipeline_mode = #tpu.pipeline_mode<synchronous>, transform_indices = @transform_3, window_bounds = array<i64: 4, 32, 8>}, {pipeline_mode = #tpu.pipeline_mode<synchronous>, transform_indices = @transform_4, window_bounds = array<i64: 4, 1, 8>}, {pipeline_mode = #tpu.pipeline_mode<synchronous>, transform_indices = @transform_5, window_bounds = array<i64: 4, 32, 8>}, {pipeline_mode = #tpu.pipeline_mode<synchronous>, transform_indices = @transform_6, window_bounds = array<i64: 4, 1, 8>}, {pipeline_mode = #tpu.pipeline_mode<synchronous>, transform_indices = @transform_7, window_bounds = array<i64: 4, 32, 8>}, {pipeline_mode = #tpu.pipeline_mode<synchronous>, transform_indices = @transform_8, window_bounds = array<i64: 4, 1, 8>}, {pipeline_mode = #tpu.pipeline_mode<synchronous>, transform_indices = @transform_9, window_bounds = array<i64: 4, 8, 32>}, {pipeline_mode = #tpu.pipeline_mode<synchronous>, transform_indices = @transform_10, window_bounds = array<i64: 1, 32>}, {transform_indices = @transform_11, window_bounds = array<i64: 1, 8, 32>}]} {
    %c0 = arith.constant 0 : index
    %c0_0 = arith.constant 0 : index
    %c0_1 = arith.constant 0 : index
    %0 = vector.load %arg1[%c0, %c0_0, %c0_1] : memref<1x8x32xf32, #tpu.memory_space<vmem>>, vector<1x8x32xf32>
    %1 = vector.shape_cast %0 : vector<1x8x32xf32> to vector<8x32xf32>
    %2 = arith.truncf %1 : vector<8x32xf32> to vector<8x32xbf16>
    %c0_2 = arith.constant 0 : index
    %c0_3 = arith.constant 0 : index
    %c0_4 = arith.constant 0 : index
    %3 = vector.load %arg2[%c0_2, %c0_3, %c0_4] : memref<1x8x32xf32, #tpu.memory_space<vmem>>, vector<1x8x32xf32>
    %4 = vector.shape_cast %3 : vector<1x8x32xf32> to vector<8x32xf32>
    %5 = arith.truncf %4 : vector<8x32xf32> to vector<8x32xbf16>
    %c0_5 = arith.constant 0 : index
    %c0_6 = arith.constant 0 : index
    %c0_7 = arith.constant 0 : index
    %6 = vector.load %arg3[%c0_5, %c0_6, %c0_7] : memref<1x8x32xf32, #tpu.memory_space<vmem>>, vector<1x8x32xf32>
    %7 = vector.shape_cast %6 : vector<1x8x32xf32> to vector<8x32xf32>
    %8 = arith.truncf %7 : vector<8x32xf32> to vector<8x32xbf16>
    %cst = arith.constant 0.000000e+00 : f32
    %9 = vector.broadcast %cst : f32 to vector<8x32xf32>
    %c0_8 = arith.constant 0 : index
    %c0_9 = arith.constant 0 : index
    %10 = vector.load %arg13[%c0_8, %c0_9] : memref<8x32xf32, #tpu.memory_space<vmem>>, vector<8x32xf32>
    tpu.vector_store %arg13[%c0_8, %c0_9], %9 {strides = array<i32>} : memref<8x32xf32, #tpu.memory_space<vmem>>, vector<8x32xf32>,
    %c0_i32 = arith.constant 0 : i32
    %c4_i32 = arith.constant 4 : i32
    %11 = arith.addi %c0_i32, %c4_i32 : i32
    %c1_i32 = arith.constant 1 : i32
    scf.for %arg14 = %c0_i32 to %11 step %c1_i32  : i32 {
      %18 = arith.index_cast %arg14 : i32 to index
      %c0_18 = arith.constant 0 : index
      %c0_19 = arith.constant 0 : index
      %19 = vector.load %arg4[%18, %c0_18, %c0_19] : memref<4x32x8xbf16, #tpu.memory_space<vmem>>, vector<1x32x8xbf16>
      %20 = vector.shape_cast %19 : vector<1x32x8xbf16> to vector<32x8xbf16>
      %cst_20 = arith.constant dense<0.000000e+00> : vector<8x8xf32>
      %21 = tpu.matmul %2, %20, %cst_20 {dimension_numbers = #tpu.dot_dimension_numbers<[1], [0], [0], [1], [0, 0, 1, 1], [], []>} : vector<8x32xbf16>, vector<32x8xbf16>, vector<8x8xf32> -> vector<8x8xf32>
      %22 = arith.index_cast %arg14 : i32 to index
      %c0_21 = arith.constant 0 : index
      %c0_22 = arith.constant 0 : index
      %23 = vector.load %arg5[%22, %c0_21, %c0_22] : memref<4x1x8xf32, #tpu.memory_space<vmem>>, vector<1x1x8xf32>
      %24 = vector.shape_cast %23 : vector<1x1x8xf32> to vector<1x8xf32>
      %25 = vector.broadcast %24 : vector<1x8xf32> to vector<8x8xf32>
      %26 = arith.addf %21, %25 : vector<8x8xf32>
      %27 = arith.index_cast %arg14 : i32 to index
      %c0_23 = arith.constant 0 : index
      %c0_24 = arith.constant 0 : index
      %28 = vector.load %arg6[%27, %c0_23, %c0_24] : memref<4x32x8xbf16, #tpu.memory_space<vmem>>, vector<1x32x8xbf16>
      %29 = vector.shape_cast %28 : vector<1x32x8xbf16> to vector<32x8xbf16>
      %cst_25 = arith.constant dense<0.000000e+00> : vector<8x8xf32>
      %30 = tpu.matmul %5, %29, %cst_25 {dimension_numbers = #tpu.dot_dimension_numbers<[1], [0], [0], [1], [0, 0, 1, 1], [], []>} : vector<8x32xbf16>, vector<32x8xbf16>, vector<8x8xf32> -> vector<8x8xf32>
      %31 = arith.index_cast %arg14 : i32 to index
      %c0_26 = arith.constant 0 : index
      %c0_27 = arith.constant 0 : index
      %32 = vector.load %arg7[%31, %c0_26, %c0_27] : memref<4x1x8xf32, #tpu.memory_space<vmem>>, vector<1x1x8xf32>
      %33 = vector.shape_cast %32 : vector<1x1x8xf32> to vector<1x8xf32>
      %34 = vector.broadcast %33 : vector<1x8xf32> to vector<8x8xf32>
      %35 = arith.addf %30, %34 : vector<8x8xf32>
      %36 = arith.index_cast %arg14 : i32 to index
      %c0_28 = arith.constant 0 : index
      %c0_29 = arith.constant 0 : index
      %37 = vector.load %arg8[%36, %c0_28, %c0_29] : memref<4x32x8xbf16, #tpu.memory_space<vmem>>, vector<1x32x8xbf16>
      %38 = vector.shape_cast %37 : vector<1x32x8xbf16> to vector<32x8xbf16>
      %cst_30 = arith.constant dense<0.000000e+00> : vector<8x8xf32>
      %39 = tpu.matmul %8, %38, %cst_30 {dimension_numbers = #tpu.dot_dimension_numbers<[1], [0], [0], [1], [0, 0, 1, 1], [], []>} : vector<8x32xbf16>, vector<32x8xbf16>, vector<8x8xf32> -> vector<8x8xf32>
      %40 = arith.index_cast %arg14 : i32 to index
      %c0_31 = arith.constant 0 : index
      %c0_32 = arith.constant 0 : index
      %41 = vector.load %arg9[%40, %c0_31, %c0_32] : memref<4x1x8xf32, #tpu.memory_space<vmem>>, vector<1x1x8xf32>
      %42 = vector.shape_cast %41 : vector<1x1x8xf32> to vector<1x8xf32>
      %43 = vector.broadcast %42 : vector<1x8xf32> to vector<8x8xf32>
      %44 = arith.addf %39, %43 : vector<8x8xf32>
      %45 = vector.shape_cast %26 : vector<8x8xf32> to vector<1x8x8xf32>
      %46 = arith.truncf %45 : vector<1x8x8xf32> to vector<1x8x8xbf16>
      %47 = vector.shape_cast %35 : vector<8x8xf32> to vector<1x8x8xf32>
      %48 = arith.truncf %47 : vector<1x8x8xf32> to vector<1x8x8xbf16>
      %49 = vector.shape_cast %44 : vector<8x8xf32> to vector<1x8x8xf32>
      %50 = arith.truncf %49 : vector<1x8x8xf32> to vector<1x8x8xbf16>
      "tpu.trace_start"() <{level = 10 : i32, message = "bqd,bkd->bqk"}> : () -> ()
      %cst_33 = arith.constant dense<0.000000e+00> : vector<1x8x8xf32>
      %51 = tpu.matmul %46, %48, %cst_33 {dimension_numbers = #tpu.dot_dimension_numbers<[2], [2], [1], [1], [0, 0, 0, 1, 1, 1], [0], [0]>} : vector<1x8x8xbf16>, vector<1x8x8xbf16>, vector<1x8x8xf32> -> vector<1x8x8xf32>
      "tpu.trace_stop"() : () -> ()
      %cst_34 = arith.constant dense<0xFF800000> : vector<1x8xf32>
      %52 = vector.multi_reduction <maximumf>, %51, %cst_34 [2] : vector<1x8x8xf32> to vector<1x8xf32>
      %53 = vector.shape_cast %52 : vector<1x8xf32> to vector<1x8x1xf32>
      %54 = vector.broadcast %53 : vector<1x8x1xf32> to vector<1x8x8xf32>
      %55 = arith.subf %51, %54 : vector<1x8x8xf32>
      %56 = math.exp %55 : vector<1x8x8xf32>
      %cst_35 = arith.constant dense<0.000000e+00> : vector<1x8xf32>
      %57 = vector.multi_reduction <add>, %56, %cst_35 [2] : vector<1x8x8xf32> to vector<1x8xf32>
      %58 = vector.shape_cast %57 : vector<1x8xf32> to vector<1x8x1xf32>
      %59 = tpu.reciprocal %58 {approx = true} : vector<1x8x1xf32> -> vector<1x8x1xf32>
      %60 = vector.broadcast %59 : vector<1x8x1xf32> to vector<1x8x8xf32>
      %61 = arith.mulf %56, %60 : vector<1x8x8xf32>
      %62 = arith.truncf %61 : vector<1x8x8xf32> to vector<1x8x8xbf16>
      "tpu.trace_start"() <{level = 10 : i32, message = "bqk,bkd->bqd"}> : () -> ()
      %cst_36 = arith.constant dense<0.000000e+00> : vector<1x8x8xf32>
      %63 = tpu.matmul %62, %50, %cst_36 {dimension_numbers = #tpu.dot_dimension_numbers<[2], [1], [1], [2], [0, 0, 0, 1, 1, 2], [0], [0]>} : vector<1x8x8xbf16>, vector<1x8x8xbf16>, vector<1x8x8xf32> -> vector<1x8x8xf32>
      "tpu.trace_stop"() : () -> ()
      %c0_37 = arith.constant 0 : index
      %c0_38 = arith.constant 0 : index
      %64 = vector.load %arg13[%c0_37, %c0_38] : memref<8x32xf32, #tpu.memory_space<vmem>>, vector<8x32xf32>
      %65 = vector.shape_cast %63 : vector<1x8x8xf32> to vector<8x8xf32>
      %66 = arith.truncf %65 : vector<8x8xf32> to vector<8x8xbf16>
      %67 = arith.index_cast %arg14 : i32 to index
      %c0_39 = arith.constant 0 : index
      %c0_40 = arith.constant 0 : index
      %68 = vector.load %arg10[%67, %c0_39, %c0_40] : memref<4x8x32xbf16, #tpu.memory_space<vmem>>, vector<1x8x32xbf16>
      %69 = vector.shape_cast %68 : vector<1x8x32xbf16> to vector<8x32xbf16>
      %cst_41 = arith.constant dense<0.000000e+00> : vector<8x32xf32>
      %70 = tpu.matmul %66, %69, %cst_41 {dimension_numbers = #tpu.dot_dimension_numbers<[1], [0], [0], [1], [0, 0, 1, 1], [], []>} : vector<8x8xbf16>, vector<8x32xbf16>, vector<8x32xf32> -> vector<8x32xf32>
      %71 = arith.addf %64, %70 : vector<8x32xf32>
      %c0_42 = arith.constant 0 : index
      %c0_43 = arith.constant 0 : index
      %72 = vector.load %arg13[%c0_42, %c0_43] : memref<8x32xf32, #tpu.memory_space<vmem>>, vector<8x32xf32>
      tpu.vector_store %arg13[%c0_42, %c0_43], %71 {strides = array<i32>} : memref<8x32xf32, #tpu.memory_space<vmem>>, vector<8x32xf32>,
    }
    %c4_i32_10 = arith.constant 4 : i32
    %c0_11 = arith.constant 0 : index
    %c0_12 = arith.constant 0 : index
    %12 = vector.load %arg13[%c0_11, %c0_12] : memref<8x32xf32, #tpu.memory_space<vmem>>, vector<8x32xf32>
    %c0_13 = arith.constant 0 : index
    %c0_14 = arith.constant 0 : index
    %13 = vector.load %arg11[%c0_13, %c0_14] : memref<1x32xf32, #tpu.memory_space<vmem>>, vector<1x32xf32>
    %14 = vector.broadcast %13 : vector<1x32xf32> to vector<8x32xf32>
    %15 = arith.addf %12, %14 : vector<8x32xf32>
    %16 = vector.shape_cast %15 : vector<8x32xf32> to vector<1x8x32xf32>
    %c0_15 = arith.constant 0 : index
    %c0_16 = arith.constant 0 : index
    %c0_17 = arith.constant 0 : index
    %17 = vector.load %arg12[%c0_15, %c0_16, %c0_17] : memref<1x8x32xf32, #tpu.memory_space<vmem>>, vector<1x8x32xf32>
    tpu.vector_store %arg12[%c0_15, %c0_16, %c0_17], %16 {strides = array<i32>} : memref<1x8x32xf32, #tpu.memory_space<vmem>>, vector<1x8x32xf32>,
    return
  }
  func.func @transform_0(%arg0: i32) -> (i32, i32, i32) {
    %c0_i32 = arith.constant 0 : i32
    %c0_i32_0 = arith.constant 0 : i32
    %c0_i32_1 = arith.constant 0 : i32
    return %arg0, %c0_i32, %c0_i32_0 : i32, i32, i32
  }
  func.func @transform_1(%arg0: i32) -> (i32, i32, i32) {
    %c0_i32 = arith.constant 0 : i32
    %c0_i32_0 = arith.constant 0 : i32
    %c0_i32_1 = arith.constant 0 : i32
    return %arg0, %c0_i32, %c0_i32_0 : i32, i32, i32
  }
  func.func @transform_2(%arg0: i32) -> (i32, i32, i32) {
    %c0_i32 = arith.constant 0 : i32
    %c0_i32_0 = arith.constant 0 : i32
    %c0_i32_1 = arith.constant 0 : i32
    return %arg0, %c0_i32, %c0_i32_0 : i32, i32, i32
  }
  func.func @transform_3(%arg0: i32) -> (i32, i32, i32) {
    %c0_i32 = arith.constant 0 : i32
    %c0_i32_0 = arith.constant 0 : i32
    %c0_i32_1 = arith.constant 0 : i32
    %c0_i32_2 = arith.constant 0 : i32
    return %c0_i32, %c0_i32_0, %c0_i32_1 : i32, i32, i32
  }
  func.func @transform_4(%arg0: i32) -> (i32, i32, i32) {
    %c0_i32 = arith.constant 0 : i32
    %c0_i32_0 = arith.constant 0 : i32
    %c0_i32_1 = arith.constant 0 : i32
    %c0_i32_2 = arith.constant 0 : i32
    return %c0_i32, %c0_i32_0, %c0_i32_1 : i32, i32, i32
  }
  func.func @transform_5(%arg0: i32) -> (i32, i32, i32) {
    %c0_i32 = arith.constant 0 : i32
    %c0_i32_0 = arith.constant 0 : i32
    %c0_i32_1 = arith.constant 0 : i32
    %c0_i32_2 = arith.constant 0 : i32
    return %c0_i32, %c0_i32_0, %c0_i32_1 : i32, i32, i32
  }
  func.func @transform_6(%arg0: i32) -> (i32, i32, i32) {
    %c0_i32 = arith.constant 0 : i32
    %c0_i32_0 = arith.constant 0 : i32
    %c0_i32_1 = arith.constant 0 : i32
    %c0_i32_2 = arith.constant 0 : i32
    return %c0_i32, %c0_i32_0, %c0_i32_1 : i32, i32, i32
  }
  func.func @transform_7(%arg0: i32) -> (i32, i32, i32) {
    %c0_i32 = arith.constant 0 : i32
    %c0_i32_0 = arith.constant 0 : i32
    %c0_i32_1 = arith.constant 0 : i32
    %c0_i32_2 = arith.constant 0 : i32
    return %c0_i32, %c0_i32_0, %c0_i32_1 : i32, i32, i32
  }
  func.func @transform_8(%arg0: i32) -> (i32, i32, i32) {
    %c0_i32 = arith.constant 0 : i32
    %c0_i32_0 = arith.constant 0 : i32
    %c0_i32_1 = arith.constant 0 : i32
    %c0_i32_2 = arith.constant 0 : i32
    return %c0_i32, %c0_i32_0, %c0_i32_1 : i32, i32, i32
  }
  func.func @transform_9(%arg0: i32) -> (i32, i32, i32) {
    %c0_i32 = arith.constant 0 : i32
    %c0_i32_0 = arith.constant 0 : i32
    %c0_i32_1 = arith.constant 0 : i32
    %c0_i32_2 = arith.constant 0 : i32
    return %c0_i32, %c0_i32_0, %c0_i32_1 : i32, i32, i32
  }
  func.func @transform_10(%arg0: i32) -> (i32, i32) {
    %c0_i32 = arith.constant 0 : i32
    %c0_i32_0 = arith.constant 0 : i32
    %c0_i32_1 = arith.constant 0 : i32
    return %c0_i32, %c0_i32_0 : i32, i32
  }
  func.func @transform_11(%arg0: i32) -> (i32, i32, i32) {
    %c0_i32 = arith.constant 0 : i32
    %c0_i32_0 = arith.constant 0 : i32
    %c0_i32_1 = arith.constant 0 : i32
    return %arg0, %c0_i32, %c0_i32_0 : i32, i32, i32
  }
}

module attributes {stable_mosaic.version = 11 : i64} {
  func.func @_mha_kernel(%arg0: i32, %arg1: memref<1x8x32xf32, #tpu.memory_space<vmem>>, %arg2: memref<1x8x32xf32, #tpu.memory_space<vmem>>, %arg3: memref<1x8x32xf32, #tpu.memory_space<vmem>>, %arg4: memref<4x32x8xbf16, #tpu.memory_space<vmem>>, %arg5: memref<4x1x8xf32, #tpu.memory_space<vmem>>, %arg6: memref<4x32x8xbf16, #tpu.memory_space<vmem>>, %arg7: memref<4x1x8xf32, #tpu.memory_space<vmem>>, %arg8: memref<4x32x8xbf16, #tpu.memory_space<vmem>>, %arg9: memref<4x1x8xf32, #tpu.memory_space<vmem>>, %arg10: memref<4x8x32xbf16, #tpu.memory_space<vmem>>, %arg11: memref<1x32xf32, #tpu.memory_space<vmem>>, %arg12: memref<1x8x32xf32, #tpu.memory_space<vmem>>, %arg13: memref<8x32xf32, #tpu.memory_space<vmem>>) attributes {dimension_semantics = [#tpu.dimension_semantics<parallel>], iteration_bounds = array<i64: 2>, scalar_prefetch = 0 : i64, scratch_operands = 1 : i64, tpu.core_type = #tpu.core_type<tc>, window_params = [{transform_indices = @transform_0, window_bounds = array<i64: 1, 8, 32>}, {transform_indices = @transform_1, window_bounds = array<i64: 1, 8, 32>}, {transform_indices = @transform_2, window_bounds = array<i64: 1, 8, 32>}, {pipeline_mode = #tpu.pipeline_mode<synchronous>, transform_indices = @transform_3, window_bounds = array<i64: 4, 32, 8>}, {pipeline_mode = #tpu.pipeline_mode<synchronous>, transform_indices = @transform_4, window_bounds = array<i64: 4, 1, 8>}, {pipeline_mode = #tpu.pipeline_mode<synchronous>, transform_indices = @transform_5, window_bounds = array<i64: 4, 32, 8>}, {pipeline_mode = #tpu.pipeline_mode<synchronous>, transform_indices = @transform_6, window_bounds = array<i64: 4, 1, 8>}, {pipeline_mode = #tpu.pipeline_mode<synchronous>, transform_indices = @transform_7, window_bounds = array<i64: 4, 32, 8>}, {pipeline_mode = #tpu.pipeline_mode<synchronous>, transform_indices = @transform_8, window_bounds = array<i64: 4, 1, 8>}, {pipeline_mode = #tpu.pipeline_mode<synchronous>, transform_indices = @transform_9, window_bounds = array<i64: 4, 8, 32>}, {pipeline_mode = #tpu.pipeline_mode<synchronous>, transform_indices = @transform_10, window_bounds = array<i64: 1, 32>}, {transform_indices = @transform_11, window_bounds = array<i64: 1, 8, 32>}]} {
    %c0 = arith.constant 0 : index
    %c0_0 = arith.constant 0 : index
    %c0_1 = arith.constant 0 : index
    %0 = vector.load %arg1[%c0, %c0_0, %c0_1] : memref<1x8x32xf32, #tpu.memory_space<vmem>>, vector<1x8x32xf32>
    %1 = vector.shape_cast %0 : vector<1x8x32xf32> to vector<8x32xf32>
    %2 = arith.truncf %1 : vector<8x32xf32> to vector<8x32xbf16>
    %c0_2 = arith.constant 0 : index
    %c0_3 = arith.constant 0 : index
    %c0_4 = arith.constant 0 : index
    %3 = vector.load %arg2[%c0_2, %c0_3, %c0_4] : memref<1x8x32xf32, #tpu.memory_space<vmem>>, vector<1x8x32xf32>
    %4 = vector.shape_cast %3 : vector<1x8x32xf32> to vector<8x32xf32>
    %5 = arith.truncf %4 : vector<8x32xf32> to vector<8x32xbf16>
    %c0_5 = arith.constant 0 : index
    %c0_6 = arith.constant 0 : index
    %c0_7 = arith.constant 0 : index
    %6 = vector.load %arg3[%c0_5, %c0_6, %c0_7] : memref<1x8x32xf32, #tpu.memory_space<vmem>>, vector<1x8x32xf32>
    %7 = vector.shape_cast %6 : vector<1x8x32xf32> to vector<8x32xf32>
    %8 = arith.truncf %7 : vector<8x32xf32> to vector<8x32xbf16>
    %cst = arith.constant 0.000000e+00 : f32
    %9 = vector.broadcast %cst : f32 to vector<8x32xf32>
    %c0_8 = arith.constant 0 : index
    %c0_9 = arith.constant 0 : index
    %10 = vector.load %arg13[%c0_8, %c0_9] : memref<8x32xf32, #tpu.memory_space<vmem>>, vector<8x32xf32>
    tpu.vector_store %arg13[%c0_8, %c0_9], %9 {strides = array<i32>} : memref<8x32xf32, #tpu.memory_space<vmem>>, vector<8x32xf32>,
    %c0_i32 = arith.constant 0 : i32
    %c4_i32 = arith.constant 4 : i32
    %11 = arith.addi %c0_i32, %c4_i32 : i32
    %c1_i32 = arith.constant 1 : i32
    scf.for %arg14 = %c0_i32 to %11 step %c1_i32  : i32 {
      %18 = arith.index_cast %arg14 : i32 to index
      %c0_18 = arith.constant 0 : index
      %c0_19 = arith.constant 0 : index
      %19 = vector.load %arg4[%18, %c0_18, %c0_19] : memref<4x32x8xbf16, #tpu.memory_space<vmem>>, vector<1x32x8xbf16>
      %20 = vector.shape_cast %19 : vector<1x32x8xbf16> to vector<32x8xbf16>
      %cst_20 = arith.constant dense<0.000000e+00> : vector<8x8xf32>
      %21 = tpu.matmul %2, %20, %cst_20 {dimension_numbers = #tpu.dot_dimension_numbers<[1], [0], [0], [1], [0, 0, 1, 1], [], []>} : vector<8x32xbf16>, vector<32x8xbf16>, vector<8x8xf32> -> vector<8x8xf32>
      %22 = arith.index_cast %arg14 : i32 to index
      %c0_21 = arith.constant 0 : index
      %c0_22 = arith.constant 0 : index
      %23 = vector.load %arg5[%22, %c0_21, %c0_22] : memref<4x1x8xf32, #tpu.memory_space<vmem>>, vector<1x1x8xf32>
      %24 = vector.shape_cast %23 : vector<1x1x8xf32> to vector<1x8xf32>
      %25 = vector.broadcast %24 : vector<1x8xf32> to vector<8x8xf32>
      %26 = arith.addf %21, %25 : vector<8x8xf32>
      %27 = arith.index_cast %arg14 : i32 to index
      %c0_23 = arith.constant 0 : index
      %c0_24 = arith.constant 0 : index
      %28 = vector.load %arg6[%27, %c0_23, %c0_24] : memref<4x32x8xbf16, #tpu.memory_space<vmem>>, vector<1x32x8xbf16>
      %29 = vector.shape_cast %28 : vector<1x32x8xbf16> to vector<32x8xbf16>
      %cst_25 = arith.constant dense<0.000000e+00> : vector<8x8xf32>
      %30 = tpu.matmul %5, %29, %cst_25 {dimension_numbers = #tpu.dot_dimension_numbers<[1], [0], [0], [1], [0, 0, 1, 1], [], []>} : vector<8x32xbf16>, vector<32x8xbf16>, vector<8x8xf32> -> vector<8x8xf32>
      %31 = arith.index_cast %arg14 : i32 to index
      %c0_26 = arith.constant 0 : index
      %c0_27 = arith.constant 0 : index
      %32 = vector.load %arg7[%31, %c0_26, %c0_27] : memref<4x1x8xf32, #tpu.memory_space<vmem>>, vector<1x1x8xf32>
      %33 = vector.shape_cast %32 : vector<1x1x8xf32> to vector<1x8xf32>
      %34 = vector.broadcast %33 : vector<1x8xf32> to vector<8x8xf32>
      %35 = arith.addf %30, %34 : vector<8x8xf32>
      %36 = arith.index_cast %arg14 : i32 to index
      %c0_28 = arith.constant 0 : index
      %c0_29 = arith.constant 0 : index
      %37 = vector.load %arg8[%36, %c0_28, %c0_29] : memref<4x32x8xbf16, #tpu.memory_space<vmem>>, vector<1x32x8xbf16>
      %38 = vector.shape_cast %37 : vector<1x32x8xbf16> to vector<32x8xbf16>
      %cst_30 = arith.constant dense<0.000000e+00> : vector<8x8xf32>
      %39 = tpu.matmul %8, %38, %cst_30 {dimension_numbers = #tpu.dot_dimension_numbers<[1], [0], [0], [1], [0, 0, 1, 1], [], []>} : vector<8x32xbf16>, vector<32x8xbf16>, vector<8x8xf32> -> vector<8x8xf32>
      %40 = arith.index_cast %arg14 : i32 to index
      %c0_31 = arith.constant 0 : index
      %c0_32 = arith.constant 0 : index
      %41 = vector.load %arg9[%40, %c0_31, %c0_32] : memref<4x1x8xf32, #tpu.memory_space<vmem>>, vector<1x1x8xf32>
      %42 = vector.shape_cast %41 : vector<1x1x8xf32> to vector<1x8xf32>
      %43 = vector.broadcast %42 : vector<1x8xf32> to vector<8x8xf32>
      %44 = arith.addf %39, %43 : vector<8x8xf32>
      %45 = vector.shape_cast %26 : vector<8x8xf32> to vector<1x8x8xf32>
      %46 = arith.truncf %45 : vector<1x8x8xf32> to vector<1x8x8xbf16>
      %47 = vector.shape_cast %35 : vector<8x8xf32> to vector<1x8x8xf32>
      %48 = arith.truncf %47 : vector<1x8x8xf32> to vector<1x8x8xbf16>
      %49 = vector.shape_cast %44 : vector<8x8xf32> to vector<1x8x8xf32>
      %50 = arith.truncf %49 : vector<1x8x8xf32> to vector<1x8x8xbf16>
      "tpu.trace_start"() <{level = 10 : i32, message = "bqd,bkd->bqk"}> : () -> ()
      %cst_33 = arith.constant dense<0.000000e+00> : vector<1x8x8xf32>
      %51 = tpu.matmul %46, %48, %cst_33 {dimension_numbers = #tpu.dot_dimension_numbers<[2], [2], [1], [1], [0, 0, 0, 1, 1, 1], [0], [0]>} : vector<1x8x8xbf16>, vector<1x8x8xbf16>, vector<1x8x8xf32> -> vector<1x8x8xf32>
      "tpu.trace_stop"() : () -> ()
      %cst_34 = arith.constant dense<0xFF800000> : vector<1x8xf32>
      %52 = vector.multi_reduction <maximumf>, %51, %cst_34 [2] : vector<1x8x8xf32> to vector<1x8xf32>
      %53 = vector.shape_cast %52 : vector<1x8xf32> to vector<1x8x1xf32>
      %54 = vector.broadcast %53 : vector<1x8x1xf32> to vector<1x8x8xf32>
      %55 = arith.subf %51, %54 : vector<1x8x8xf32>
      %56 = math.exp %55 : vector<1x8x8xf32>
      %cst_35 = arith.constant dense<0.000000e+00> : vector<1x8xf32>
      %57 = vector.multi_reduction <add>, %56, %cst_35 [2] : vector<1x8x8xf32> to vector<1x8xf32>
      %58 = vector.shape_cast %57 : vector<1x8xf32> to vector<1x8x1xf32>
      %59 = tpu.reciprocal %58 {approx = true} : vector<1x8x1xf32> -> vector<1x8x1xf32>
      %60 = vector.broadcast %59 : vector<1x8x1xf32> to vector<1x8x8xf32>
      %61 = arith.mulf %56, %60 : vector<1x8x8xf32>
      %62 = arith.truncf %61 : vector<1x8x8xf32> to vector<1x8x8xbf16>
      "tpu.trace_start"() <{level = 10 : i32, message = "bqk,bkd->bqd"}> : () -> ()
      %cst_36 = arith.constant dense<0.000000e+00> : vector<1x8x8xf32>
      %63 = tpu.matmul %62, %50, %cst_36 {dimension_numbers = #tpu.dot_dimension_numbers<[2], [1], [1], [2], [0, 0, 0, 1, 1, 2], [0], [0]>} : vector<1x8x8xbf16>, vector<1x8x8xbf16>, vector<1x8x8xf32> -> vector<1x8x8xf32>
      "tpu.trace_stop"() : () -> ()
      %c0_37 = arith.constant 0 : index
      %c0_38 = arith.constant 0 : index
      %64 = vector.load %arg13[%c0_37, %c0_38] : memref<8x32xf32, #tpu.memory_space<vmem>>, vector<8x32xf32>
      %65 = vector.shape_cast %63 : vector<1x8x8xf32> to vector<8x8xf32>
      %66 = arith.truncf %65 : vector<8x8xf32> to vector<8x8xbf16>
      %67 = arith.index_cast %arg14 : i32 to index
      %c0_39 = arith.constant 0 : index
      %c0_40 = arith.constant 0 : index
      %68 = vector.load %arg10[%67, %c0_39, %c0_40] : memref<4x8x32xbf16, #tpu.memory_space<vmem>>, vector<1x8x32xbf16>
      %69 = vector.shape_cast %68 : vector<1x8x32xbf16> to vector<8x32xbf16>
      %cst_41 = arith.constant dense<0.000000e+00> : vector<8x32xf32>
      %70 = tpu.matmul %66, %69, %cst_41 {dimension_numbers = #tpu.dot_dimension_numbers<[1], [0], [0], [1], [0, 0, 1, 1], [], []>} : vector<8x8xbf16>, vector<8x32xbf16>, vector<8x32xf32> -> vector<8x32xf32>
      %71 = arith.addf %64, %70 : vector<8x32xf32>
      %c0_42 = arith.constant 0 : index
      %c0_43 = arith.constant 0 : index
      %72 = vector.load %arg13[%c0_42, %c0_43] : memref<8x32xf32, #tpu.memory_space<vmem>>, vector<8x32xf32>
      tpu.vector_store %arg13[%c0_42, %c0_43], %71 {strides = array<i32>} : memref<8x32xf32, #tpu.memory_space<vmem>>, vector<8x32xf32>,
    }
    %c4_i32_10 = arith.constant 4 : i32
    %c0_11 = arith.constant 0 : index
    %c0_12 = arith.constant 0 : index
    %12 = vector.load %arg13[%c0_11, %c0_12] : memref<8x32xf32, #tpu.memory_space<vmem>>, vector<8x32xf32>
    %c0_13 = arith.constant 0 : index
    %c0_14 = arith.constant 0 : index
    %13 = vector.load %arg11[%c0_13, %c0_14] : memref<1x32xf32, #tpu.memory_space<vmem>>, vector<1x32xf32>
    %14 = vector.broadcast %13 : vector<1x32xf32> to vector<8x32xf32>
    %15 = arith.addf %12, %14 : vector<8x32xf32>
    %16 = vector.shape_cast %15 : vector<8x32xf32> to vector<1x8x32xf32>
    %c0_15 = arith.constant 0 : index
    %c0_16 = arith.constant 0 : index
    %c0_17 = arith.constant 0 : index
    %17 = vector.load %arg12[%c0_15, %c0_16, %c0_17] : memref<1x8x32xf32, #tpu.memory_space<vmem>>, vector<1x8x32xf32>
    tpu.vector_store %arg12[%c0_15, %c0_16, %c0_17], %16 {strides = array<i32>} : memref<1x8x32xf32, #tpu.memory_space<vmem>>, vector<1x8x32xf32>,
    return
  }
  func.func @transform_0(%arg0: i32) -> (i32, i32, i32) {
    %c0_i32 = arith.constant 0 : i32
    %c0_i32_0 = arith.constant 0 : i32
    %c0_i32_1 = arith.constant 0 : i32
    return %arg0, %c0_i32, %c0_i32_0 : i32, i32, i32
  }
  func.func @transform_1(%arg0: i32) -> (i32, i32, i32) {
    %c0_i32 = arith.constant 0 : i32
    %c0_i32_0 = arith.constant 0 : i32
    %c0_i32_1 = arith.constant 0 : i32
    return %arg0, %c0_i32, %c0_i32_0 : i32, i32, i32
  }
  func.func @transform_2(%arg0: i32) -> (i32, i32, i32) {
    %c0_i32 = arith.constant 0 : i32
    %c0_i32_0 = arith.constant 0 : i32
    %c0_i32_1 = arith.constant 0 : i32
    return %arg0, %c0_i32, %c0_i32_0 : i32, i32, i32
  }
  func.func @transform_3(%arg0: i32) -> (i32, i32, i32) {
    %c0_i32 = arith.constant 0 : i32
    %c0_i32_0 = arith.constant 0 : i32
    %c0_i32_1 = arith.constant 0 : i32
    %c0_i32_2 = arith.constant 0 : i32
    return %c0_i32, %c0_i32_0, %c0_i32_1 : i32, i32, i32
  }
  func.func @transform_4(%arg0: i32) -> (i32, i32, i32) {
    %c0_i32 = arith.constant 0 : i32
    %c0_i32_0 = arith.constant 0 : i32
    %c0_i32_1 = arith.constant 0 : i32
    %c0_i32_2 = arith.constant 0 : i32
    return %c0_i32, %c0_i32_0, %c0_i32_1 : i32, i32, i32
  }
  func.func @transform_5(%arg0: i32) -> (i32, i32, i32) {
    %c0_i32 = arith.constant 0 : i32
    %c0_i32_0 = arith.constant 0 : i32
    %c0_i32_1 = arith.constant 0 : i32
    %c0_i32_2 = arith.constant 0 : i32
    return %c0_i32, %c0_i32_0, %c0_i32_1 : i32, i32, i32
  }
  func.func @transform_6(%arg0: i32) -> (i32, i32, i32) {
    %c0_i32 = arith.constant 0 : i32
    %c0_i32_0 = arith.constant 0 : i32
    %c0_i32_1 = arith.constant 0 : i32
    %c0_i32_2 = arith.constant 0 : i32
    return %c0_i32, %c0_i32_0, %c0_i32_1 : i32, i32, i32
  }
  func.func @transform_7(%arg0: i32) -> (i32, i32, i32) {
    %c0_i32 = arith.constant 0 : i32
    %c0_i32_0 = arith.constant 0 : i32
    %c0_i32_1 = arith.constant 0 : i32
    %c0_i32_2 = arith.constant 0 : i32
    return %c0_i32, %c0_i32_0, %c0_i32_1 : i32, i32, i32
  }
  func.func @transform_8(%arg0: i32) -> (i32, i32, i32) {
    %c0_i32 = arith.constant 0 : i32
    %c0_i32_0 = arith.constant 0 : i32
    %c0_i32_1 = arith.constant 0 : i32
    %c0_i32_2 = arith.constant 0 : i32
    return %c0_i32, %c0_i32_0, %c0_i32_1 : i32, i32, i32
  }
  func.func @transform_9(%arg0: i32) -> (i32, i32, i32) {
    %c0_i32 = arith.constant 0 : i32
    %c0_i32_0 = arith.constant 0 : i32
    %c0_i32_1 = arith.constant 0 : i32
    %c0_i32_2 = arith.constant 0 : i32
    return %c0_i32, %c0_i32_0, %c0_i32_1 : i32, i32, i32
  }
  func.func @transform_10(%arg0: i32) -> (i32, i32) {
    %c0_i32 = arith.constant 0 : i32
    %c0_i32_0 = arith.constant 0 : i32
    %c0_i32_1 = arith.constant 0 : i32
    return %c0_i32, %c0_i32_0 : i32, i32
  }
  func.func @transform_11(%arg0: i32) -> (i32, i32, i32) {
    %c0_i32 = arith.constant 0 : i32
    %c0_i32_0 = arith.constant 0 : i32
    %c0_i32_1 = arith.constant 0 : i32
    return %arg0, %c0_i32, %c0_i32_0 : i32, i32, i32
  }
}

</mosaic_0001>

<bundles_post_ra>
// kernel: tpu_custom_call.1
= control target key start
LH: loop header
LB: loop body
LE: loop exit
PB: predicated region body
PF: predicated region fallthrough
CT: control target
= control target key end

     0   :  { %16 = vsyncpa [#allocation4], 0  ;;  %s1401_s0 = inlined_call_operand.vmem [shape: f32[2,8,32], index: 0, kind: input, shape index: {}]   ;;  %s1402_s1 = inlined_call_operand.vmem [shape: f32[2,8,32], index: 1, kind: input, shape index: {}]   ;;  %s1403_s2 = inlined_call_operand.vmem [shape: f32[2,8,32], index: 2, kind: input, shape index: {}]   ;;  %s1404_s3 = inlined_call_operand.vmem [shape: bf16[4,32,8], index: 3, kind: input, shape index: {}]   ;;  %s1405_s4 = inlined_call_operand.vmem [shape: f32[4,1,8], index: 4, kind: input, shape index: {}]   ;;  %s1406_s5 = inlined_call_operand.vmem [shape: bf16[4,32,8], index: 5, kind: input, shape index: {}]   ;;  %s1407_s6 = inlined_call_operand.vmem [shape: f32[4,1,8], index: 6, kind: input, shape index: {}]   ;;  %s1408_s7 = inlined_call_operand.vmem [shape: bf16[4,32,8], index: 7, kind: input, shape index: {}]   ;;  %s1409_s8 = inlined_call_operand.vmem [shape: f32[4,1,8], index: 8, kind: input, shape index: {}]   ;;  %s1410_s9 = inlined_call_operand.vmem [shape: bf16[4,8,32], index: 9, kind: input, shape index: {}]   ;;  %s1411_s10 = inlined_call_operand.vmem [shape: f32[1,32], index: 10, kind: input, shape index: {}]   ;;  %s1412_s11 = inlined_call_operand.hbm [shape: f32[2,8,32], index: 11, kind: output, shape index: {}]  }
   0x1   :  { %18 = vsyncpa [#allocation4 + $0x1], 0  ;;  %s1211_s17 = smov 0   ;;  %s1213_s18 = smov 0  }
   0x2   :  { %s1215_s19 = smov 0   ;;  %s1217_s20 = smov 0  }
   0x3 LB: > { %1417 = sst [smem:[#allocation6_spill]] %s1137_s19  ;;  %s1232_s21 = sadd.s32 4294967295, %s1141_s20   ;;  %s1141_s20 = sphi %s1217_s20, %s1423_s20   ;;  %s1137_s19 = sphi %s1215_s19, %s1425_s19   ;;  %s1133_s18 = sphi %s1213_s18, %s1427_s18   ;;  %s1129_s17 = sphi %s1211_s17, %s1426_s17  }
   0x4   : > { %s924_s22 = sadd.s32 4294967294, %s1141_s20   ;;  %s1236_s23 = sadd.s32 1, %s1141_s20  }
   0x5   : > { %1418 = sst [smem:[#allocation7_spill]] %s1236_s23  ;;  %s277_s24 = sadd.s32 1, %s1137_s19 }
   0x6   : > { %s274_s25 = ssub.s32 %s1141_s20, %s1236_s23  ;;  %p287_p0 = scmp.ne.s32.totalorder %s1137_s19, %s1133_s18 }
   0x7   : > { %p275_p1 = scmp.eq.s32.totalorder %s274_s25, 0  ;;  %p288_p2 = scmp.eq.s32.totalorder %s1232_s21, 1 }
   0x8   : > { %p293_p3 = scmp.ne.s32.totalorder %s1133_s18, %s1129_s17  ;;  %p294_p4 = scmp.eq.s32.totalorder %s924_s22, 1 }
   0x9   : > { %s1247_s26 = scalar_select %p275_p1, %s1137_s19, %s277_s24  }
   0xa   : > { %p1249_p5 = por %p288_p2, %p287_p0  ;;  %p1253_p6 = por %p294_p4, %p293_p3 }
   0xb   : > { %1419 = sst [smem:[#allocation8_spill]] %s1247_s26  ;;  %p927_p7 = scmp.ge.s32.totalorder %s1141_s20, 1 }
   0xc   : > { %p357_p8 = scmp.lt.s32.totalorder %s1141_s20, 3 }
   0xe   : > { %p358_p9 = pnand %p927_p7, %p357_p8 }
   0xf   : > { %s1416_s29 = sand.u32 (!%p358_p9), 1, %s1133_s18   ;;  %p404_p10 = scmp.lt.s32.totalorder (!%p358_p9), %s1232_s21, 1 }
  0x10   : > { %361 = sbr.rel (%p358_p9) target bundleno = 1164 (0x48c), region = 64  ;;  %s1263_s30 = sshll.u32 (!%p358_p9), %s1416_s29, 3 }
  0x11   : > { %s1289_s14 = smov (!%p358_p9), 0  }
  0x15   : > { %vm423_vm0 = vcmask 261120   ;;  %v1147_v0 = vmov 0.0   ;;  %s405_s12 = scalar_select %p404_p10, %s1232_s21, 1 }
  0x16   : > { %424 = vst.msk [vmem:[#allocation2] sm:$0xff] %vm423_vm0, %v1147_v0 }
  0x17   : > { %s929_s13 = sshll.u32 %s405_s12, 3  ;;  %s403_s12 = scalar_lea.vmem [#allocation3], %s1263_s30 }
  0x18   : > { %s407_s16 = scalar_lea.vmem %s1401_s0, %s929_s13  ;;  %s411_s25 = scalar_lea.vmem %s1402_s1, %s929_s13 }
  0x19   : > { %s415_s23 = scalar_lea.vmem %s1403_s2, %s929_s13  ;;  %v1276_v1 = vld [vmem:[%s407_s16] sm:$0xff] }
  0x1a   : > { %v1278_v2 = vld [vmem:[%s411_s25] sm:$0xff]  ;;  %v418_v3 = vpack.c.bf16 %v1276_v1, %v1276_v1 }
  0x1b   : > { %v420_v4 = vpack.c.bf16 %v1278_v2, %v1278_v2  ;;  %v1284_v5 = vld [vmem:[%s415_s23] sm:$0xff] }
  0x1c   : > { %v422_v6 = vpack.c.bf16 %v1284_v5, %v1284_v5 }
  0x1d LB: >> { %v1148_v7 = vmov 0.0   ;;  %s957_s19 = sshll.u32 %s1145_s14, 4  ;;  %vm1149_vm1 = vmmov 0   ;;  %s507_s26 = scalar_lea.vmem %s1407_s6, %s1145_s14  ;;  %vm642_vm2 = vcmask 64512   ;;  %vm704_vm3 = vcmask 1043456   ;;  %v748_v58 = vld [vmem:[#allocation2] sm:$0xff]  ;;  %s1145_s14 = sphi %s1289_s14, %s430_s14  }
  0x1e   : >> { %983 = vmatprep.subr.bf16.mxu1 %v1148_v7  ;;  %975 = vmatprep.subr.bf16.mxu0 %v1148_v7  ;;  %s502_s13 = scalar_lea.vmem %s1406_s5, %s957_s19  ;;  %s433_s22 = scalar_lea.vmem %s1404_s3, %s957_s19  ;;  %v939_v12 = vld [vmem:[%s507_s26] ss:$0 sm:$0xff] }
  0x1f   : >> { %987 = vmatprep.mubr.msk.bf16.mxu1 %vm1149_vm1, %v1148_v7  ;;  %979 = vmatprep.mubr.msk.bf16.mxu0 %vm1149_vm1, %v1148_v7  ;;  %v1067_v8 = vld [vmem:[%s502_s13 + $0x8] sm:$0xff]   ;;  %v1069_v10 = vld [vmem:[%s502_s13] sm:$0xff]   ;;  %s1306_s29 = scalar_lea.vmem %s1408_s7, %s957_s19  ;;  %s438_s16 = scalar_lea.vmem %s1405_s4, %s1145_s14 }
  0x20   : >> { %v1068_v9 = vld [vmem:[%s433_s22 + $0x8] sm:$0xff]   ;;  %984 = vmatpush3.bf16.msra.mxu1 %v1067_v8  ;;  %v1070_v11 = vld [vmem:[%s433_s22] sm:$0xff]   ;;  %s576_s24 = scalar_lea.vmem %s1409_s8, %s1145_s14  ;;  %s950_s25 = sshll.u32 %s1145_s14, 2 }
  0x21   : >> { %976 = vmatpush3.bf16.msra.mxu0 %v1068_v9  ;;  %985 = vmatprep.subr.bf16.mxu1 %v1148_v7  ;;  %v934_v17 = vld [vmem:[%s438_s16] ss:$0 sm:$0xff]  ;;  %v1071_v27 = vld [vmem:[%s1306_s29 + $0x8] sm:$0xff]   ;;  %s751_s26 = scalar_lea.vmem %s1410_s9, %s950_s25  ;;  %s430_s14 = sadd.s32 1, %s1145_s14  }
  0x22   : >> { %977 = vmatprep.subr.bf16.mxu0 %v1148_v7  ;;  %v1072_v28 = vld [vmem:[%s1306_s29] sm:$0xff]   ;;  %p427_p11 = scmp.ge.s32.totalorder %s430_s14, 4  }
  0x23   : >> { %v944_v40 = vld [vmem:[%s576_s24] ss:$0 sm:$0xff]  ;;  %s954_s16 = sshll.u32 (%p427_p11), %s1232_s21, 7  ;;  %s825_s14 = sshll.u32 (%p427_p11), %s403_s12, 4  ;;  %s826_s14 = int_to_ptr.vmem [resolvable:$true] %s825_s14 }
  0x24   : >> { %986 = vmatpush3.bf16.msra.mxu1 %v1069_v10  ;;  %v752_v47 = vld [vmem:[%s751_s26] sm:$0xf]  ;;  %s1359_s24 = scalar_lea.hbm (%p427_p11), %s1412_s11, %s954_s16  ;;  %s1422_s25 = sand.u32 (%p427_p11), 1, %s1133_s18  }
  0x25   : >> { %978 = vmatpush3.bf16.msra.mxu0 %v1070_v11  ;;  %999 = vmatprep.subr.bf16.mxu1 %v1148_v7  ;;  %v757_v48 = vsel %vm704_vm3, %v752_v47, 0  ;;  %s812_s19 = scalar_lea.sflag (%p427_p11), [#allocation4], %s1422_s25  ;;  %s1077_s23 = scalar_lea.vmem (%p427_p11), %s826_s14, 128 }
  0x26   : >> { %991 = vmatprep.subr.bf16.mxu0 %v1148_v7  ;;  %p1078_p12 = scmp.ne.s32.totalorder (%p427_p11), %s826_s14, %s1077_s23  ;;  %s1150_s21 = smov (%p427_p11), [#allocation3]  }
  0x27   : >> { %988 = vmatmul.mubr.msk.bf16.vlgmr.msra.gmra.mxu1 %vm423_vm0, %v420_v4  ;;  %s1081_s26 = sshll.u32 (%p427_p11), %s1150_s21, 4  ;;  %s1082_s26 = int_to_ptr.vmem [resolvable:$false] %s1081_s26 }
  0x28   : >> { %980 = vmatmul.mubr.msk.bf16.vlgmr.msra.gmra.mxu0 %vm423_vm0, %v418_v3  ;;  %1001 = vmatprep.mubr.msk.bf16.mxu1 %vm1149_vm1, %v1148_v7  ;;  %p1079_p13 = pnand (%p427_p11), %p1078_p12, %p1249_p5  ;;  %s1083_s13 = scalar_lea.vmem (%p427_p11), %s1082_s26, 256 }
  0x29   : >> { %995 = vmatprep.mubr.msk.bf16.mxu0 %vm1149_vm1, %v1148_v7  ;;  %992 = vmatpush3.bf16.msra.mxu0 %v1071_v27  ;;  %p1084_p1 = scmp.lt.s32.totalorder (%p427_p11), %s826_s14, %s1082_s26  ;;  %p1085_p2 = scmp.lt.s32.totalorder (%p427_p11), %s1083_s13, %s1077_s23 }
  0x2a   : >> { %993 = vmatprep.subr.bf16.mxu0 %v1148_v7  ;;  %p1080_p0 = pneg (%p427_p11), %p1079_p13 }
  0x2b   : > { %p1086_p3 = por (%p427_p11), %p1085_p2, %p1084_p1 }
  0x2d   : >> { %994 = vmatpush3.bf16.msra.mxu0 %v1072_v28  ;;  %p1087_p4 = pnand (%p427_p11), %p1086_p3, %p1080_p0 }
  0x2e   : >> { %1005 = vmatprep.subr.bf16.mxu0 %v1148_v7 }
  0x30   : >> { %996 = vmatmul.mubr.msk.bf16.vlgmr.msra.gmra.mxu0 %vm423_vm0, %v422_v6 }
  0x31   : >> { %1007 = vmatprep.mubr.msk.bf16.mxu0 %vm1149_vm1, %v1148_v7 }
  0xe7   : >> { %v564_v13 = vpop.f32.mrf.mxu1 }
  0xe8   : >> { %v565_v14 = vadd.f32 %v939_v12, %v564_v13  ;;  %v495_v15 = vpop.f32.mrf.mxu0 }
  0xe9   : >> { %v989_v16 = vpop.f32.mrf.mxu1  ;;  %v496_v22 = vadd.f32 %v934_v17, %v495_v15 }
  0xea   : >> { %v640_v18 = vpack.c.bf16 %v565_v14, %v565_v14  ;;  %v981_v19 = vpop.f32.mrf.mxu0 }
  0xeb   : >> { %v567_v20 = vpop.f32.mrf.mxu1  ;;  %v639_v26 = vpack.c.bf16 %v496_v22, %v496_v22 }
  0xec   : >> { %v647_v21 = vsel %vm642_vm2, %v640_v18, 0  ;;  %v498_v23 = vpop.f32.mrf.mxu0 }
  0xed   : >> { %v990_v24 = vpop.f32.mrf.mxu1  ;;  %1000 = vmatpush3.bf16.xpose.msra.mxu1 %v647_v21 }
  0xee   : >> { %v982_v25 = vpop.f32.mrf.mxu0  ;;  %1011 = vmatprep.subr.bf16.mxu1 %v1148_v7 }
  0xf0   : >> { %v633_v39 = vpop.f32.mrf.mxu0 }
  0xf1   : >> { %v634_v41 = vadd.f32 %v944_v40, %v633_v39 }
  0xf2   : >> { %v997_v42 = vpop.f32.mrf.mxu0 }
  0xf3   : >> { %v641_v43 = vpack.c.bf16 %v634_v41, %v634_v41 }
  0xf4   : >> { %1002 = vmatmul.mubr.msk.bf16.vlgmr.msra.gmra.mxu1 %vm642_vm2, %v639_v26  ;;  %v636_v44 = vpop.f32.mrf.mxu0 }
  0xf5   : >> { %1013 = vmatprep.mubr.msk.bf16.mxu1 %vm1149_vm1, %v1148_v7  ;;  %v706_v45 = vsel %vm704_vm3, %v641_v43, 0  ;;  %1012 = vmatpush3.bf16.msra.mxu1 %v757_v48  ;;  %v952_v7 = vld [vmem:[%s1411_s10] ss:$0 sm:$0xff] (%p427_p11) }
  0xf6   : >> { %v998_v46 = vpop.f32.mrf.mxu0  ;;  %1006 = vmatpush3.bf16.msra.mxu0 %v706_v45 }
 0x1b4   : >> { %v683_v29 = vpop.f32.mrf.mxu1 }
 0x1b5   : >> { %v689_v30 = vsel %vm642_vm2, %v683_v29, -inf }
 0x1b6   : >> { %690 = vmax.xlane.f32.xlu0 %v689_v30  ;;  %v1003_v31 = vpop.f32.mrf.mxu1 }
 0x1b8   : >> { %v686_v32 = vpop.f32.mrf.mxu1 }
 0x1ba   : >> { %v1004_v33 = vpop.f32.mrf.mxu1 }
 0x23f   : >> { %v691_v34 = vpop.xlane.xlu0 %690 }
 0x240   : >> { %v692_v35 = vsub.f32 %v683_v29, %v691_v34 }
 0x242   : >> { %v693_v36 = vmul.f32 1.442695, %v692_v35 }
 0x244   : >> { %1073 = vpow2.f32 %v693_v36 }
 0x251   : >> { %v1074_v37 = vpop.eup %1073 }
 0x252   : >> { %v695_v38 = vsel %vm642_vm2, %v1074_v37, 0.0 }
 0x253   : >> { %696 = vadd.xlane.f32.xlu0 %v695_v38 }
 0x2dc   : >> { %v697_v49 = vpop.xlane.xlu0 %696 }
 0x2dd   : >> { %1075 = vrcp.f32 %v697_v49 }
 0x2ea   : >> { %v1076_v50 = vpop.eup %1075 }
 0x2eb   : >> { %v699_v51 = vmul.f32 %v1076_v50, %v1074_v37 }
 0x2ed   : >> { %v700_v52 = vpack.c.bf16 %v699_v51, %v699_v51 }
 0x2ef   : >> { %1008 = vmatmul.mubr.msk.bf16.vlgmr.msra.gmra.mxu0 %vm642_vm2, %v700_v52 }
 0x3af   : >> { %v742_v53 = vpop.f32.mrf.mxu0 }
 0x3b0   : >> { %v749_v54 = vpack.c.bf16 %v742_v53, %v742_v53 }
 0x3b1   : >> { %v1009_v55 = vpop.f32.mrf.mxu0 }
 0x3b2   : >> { %1014 = vmatmul.mubr.msk.bf16.vlgmr.msra.gmra.mxu1 %vm642_vm2, %v749_v54 }
 0x3b3   : >> { %v745_v56 = vpop.f32.mrf.mxu0 }
 0x3b5   : >> { %v1010_v57 = vpop.f32.mrf.mxu0 }
 0x472   : >> { %v793_v59 = vpop.f32.mrf.mxu1 }
 0x473   : >> { %v799_v60 = vadd.f32 %v793_v59, %v748_v58 }
 0x474   : >> { %v1015_v61 = vpop.f32.mrf.mxu1 }
 0x475   : >> { %800 = vst.msk [vmem:[#allocation2] sm:$0xff] %vm423_vm0, %v799_v60 }
 0x476   : >> { %v796_v62 = vpop.f32.mrf.mxu1 }
 0x478   : >> { %v1016_v63 = vpop.f32.mrf.mxu1 }
 0x47a   : > { %429 = sbr.rel (!%p427_p11) target bundleno = 29 (0x1d), region = 119 }
 0x47c   : > { %v801_v0 = vld [vmem:[#allocation2] sm:$0xff] (%p427_p11) }
 0x47d   : > { %v809_v8 = vadd.f32 (%p427_p11), %v952_v7, %v801_v0 }
 0x47f   : > { %810 = vst.msk [vmem:[%s403_s12] sm:$0xff] %vm423_vm0, %v809_v8 }
 0x480   : > { %1090 = shalt.err (!%p1087_p4)
}
 0x481   : > { %s1091_s30 = scalar_lea.hbm %s1359_s24, 128  ;;  %s1095_s16 = scalar_lea.hbm %s1412_s11, 256 }
 0x482   : > { %p1092_p7 = scmp.ne.s32.totalorder %s1359_s24, %s1091_s30  ;;  %p1096_p10 = scmp.lt.s32.totalorder %s1359_s24, %s1412_s11 }
 0x483   : > { %p1097_p11 = scmp.lt.s32.totalorder %s1095_s16, %s1091_s30 }
 0x484   : > { %p1093_p8 = pnand %p1092_p7, %p1249_p5 }
 0x485   : > { %p1098_p12 = por %p1097_p11, %p1096_p10 }
 0x486   : > { %p1094_p9 = pneg %p1093_p8 }
 0x488   : > { %p1099_p13 = pnand %p1098_p12, %p1094_p9 }
 0x48a   : > { %1102 = shalt.err (!%p1099_p13)
}
 0x48b   : > { %1017 = dma.vmem_to_hbm [thread:$0]  (%p1249_p5), %s826_s14, 128, %s1359_s24, %s812_s19  }
 0x48c PF: > { %p1023_p0 = scmp.ge.s32.totalorder %s1141_s20, 2  ;;  %s837_s25 = sand.u32 1, %s1129_s17  }
 0x48d   : > { %s838_s23 = scalar_lea.sflag [#allocation4], %s837_s25 }
 0x48e   : > { %p1020_p1 = pnand %p1023_p0, %p1253_p6 }
 0x490   : > { %p1021_p2 = pneg %p1020_p1 }
 0x492   : > { %1124 = dma.done.wait (%p1021_p2), %s838_s23, 128  }
 0x493   : > { %1126 = vsyncadd (%p1021_p2), %s838_s23, 4294967168  ;;  %s1423_s20 = sld [smem:[#allocation7_spill]]  ;;  %s1426_s17 = smov %s1133_s18 }
 0x494   : > { %s1424_s21 = sld [smem:[#allocation6_spill]] }
 0x495   : > { %s1425_s19 = sld [smem:[#allocation8_spill]] }
 0x499   : > { %p21_p3 = scmp.ge.s32.totalorder %s1423_s20, 4  }
 0x49a   : > { %s1427_s18 = smov %s1424_s21 }
 0x49b   :  { %23 = sbr.rel (!%p21_p3) target bundleno = 3 (0x3), region = 130 }
 0x4a0   :  { %843 = vsyncpa [#allocation4], 1 }
 0x4a1   :  { %845 = vsyncpa [#allocation4 + $0x1], 1 }

// kernel: tpu_custom_call.1
= control target key start
LH: loop header
LB: loop body
LE: loop exit
PB: predicated region body
PF: predicated region fallthrough
CT: control target
= control target key end

     0   :  { %16 = vsyncpa [#allocation4], 0  ;;  %s1401_s0 = inlined_call_operand.vmem [shape: f32[2,8,32], index: 0, kind: input, shape index: {}]   ;;  %s1402_s1 = inlined_call_operand.vmem [shape: f32[2,8,32], index: 1, kind: input, shape index: {}]   ;;  %s1403_s2 = inlined_call_operand.vmem [shape: f32[2,8,32], index: 2, kind: input, shape index: {}]   ;;  %s1404_s3 = inlined_call_operand.vmem [shape: bf16[4,32,8], index: 3, kind: input, shape index: {}]   ;;  %s1405_s4 = inlined_call_operand.vmem [shape: f32[4,1,8], index: 4, kind: input, shape index: {}]   ;;  %s1406_s5 = inlined_call_operand.vmem [shape: bf16[4,32,8], index: 5, kind: input, shape index: {}]   ;;  %s1407_s6 = inlined_call_operand.vmem [shape: f32[4,1,8], index: 6, kind: input, shape index: {}]   ;;  %s1408_s7 = inlined_call_operand.vmem [shape: bf16[4,32,8], index: 7, kind: input, shape index: {}]   ;;  %s1409_s8 = inlined_call_operand.vmem [shape: f32[4,1,8], index: 8, kind: input, shape index: {}]   ;;  %s1410_s9 = inlined_call_operand.vmem [shape: bf16[4,8,32], index: 9, kind: input, shape index: {}]   ;;  %s1411_s10 = inlined_call_operand.vmem [shape: f32[1,32], index: 10, kind: input, shape index: {}]   ;;  %s1412_s11 = inlined_call_operand.hbm [shape: f32[2,8,32], index: 11, kind: output, shape index: {}]  }
   0x1   :  { %18 = vsyncpa [#allocation4 + $0x1], 0  ;;  %s1211_s17 = smov 0   ;;  %s1213_s18 = smov 0  }
   0x2   :  { %s1215_s19 = smov 0   ;;  %s1217_s20 = smov 0  }
   0x3 LB: > { %1417 = sst [smem:[#allocation6_spill]] %s1137_s19  ;;  %s1232_s21 = sadd.s32 4294967295, %s1141_s20   ;;  %s1141_s20 = sphi %s1217_s20, %s1423_s20   ;;  %s1137_s19 = sphi %s1215_s19, %s1425_s19   ;;  %s1133_s18 = sphi %s1213_s18, %s1427_s18   ;;  %s1129_s17 = sphi %s1211_s17, %s1426_s17  }
   0x4   : > { %s924_s22 = sadd.s32 4294967294, %s1141_s20   ;;  %s1236_s23 = sadd.s32 1, %s1141_s20  }
   0x5   : > { %1418 = sst [smem:[#allocation7_spill]] %s1236_s23  ;;  %s277_s24 = sadd.s32 1, %s1137_s19 }
   0x6   : > { %s274_s25 = ssub.s32 %s1141_s20, %s1236_s23  ;;  %p287_p0 = scmp.ne.s32.totalorder %s1137_s19, %s1133_s18 }
   0x7   : > { %p275_p1 = scmp.eq.s32.totalorder %s274_s25, 0  ;;  %p288_p2 = scmp.eq.s32.totalorder %s1232_s21, 1 }
   0x8   : > { %p293_p3 = scmp.ne.s32.totalorder %s1133_s18, %s1129_s17  ;;  %p294_p4 = scmp.eq.s32.totalorder %s924_s22, 1 }
   0x9   : > { %s1247_s26 = scalar_select %p275_p1, %s1137_s19, %s277_s24  }
   0xa   : > { %p1249_p5 = por %p288_p2, %p287_p0  ;;  %p1253_p6 = por %p294_p4, %p293_p3 }
   0xb   : > { %1419 = sst [smem:[#allocation8_spill]] %s1247_s26  ;;  %p927_p7 = scmp.ge.s32.totalorder %s1141_s20, 1 }
   0xc   : > { %p357_p8 = scmp.lt.s32.totalorder %s1141_s20, 3 }
   0xe   : > { %p358_p9 = pnand %p927_p7, %p357_p8 }
   0xf   : > { %s1416_s29 = sand.u32 (!%p358_p9), 1, %s1133_s18   ;;  %p404_p10 = scmp.lt.s32.totalorder (!%p358_p9), %s1232_s21, 1 }
  0x10   : > { %361 = sbr.rel (%p358_p9) target bundleno = 1164 (0x48c), region = 64  ;;  %s1263_s30 = sshll.u32 (!%p358_p9), %s1416_s29, 3 }
  0x11   : > { %s1289_s14 = smov (!%p358_p9), 0  }
  0x15   : > { %vm423_vm0 = vcmask 261120   ;;  %v1147_v0 = vmov 0.0   ;;  %s405_s12 = scalar_select %p404_p10, %s1232_s21, 1 }
  0x16   : > { %424 = vst.msk [vmem:[#allocation2] sm:$0xff] %vm423_vm0, %v1147_v0 }
  0x17   : > { %s929_s13 = sshll.u32 %s405_s12, 3  ;;  %s403_s12 = scalar_lea.vmem [#allocation3], %s1263_s30 }
  0x18   : > { %s407_s16 = scalar_lea.vmem %s1401_s0, %s929_s13  ;;  %s411_s25 = scalar_lea.vmem %s1402_s1, %s929_s13 }
  0x19   : > { %s415_s23 = scalar_lea.vmem %s1403_s2, %s929_s13  ;;  %v1276_v1 = vld [vmem:[%s407_s16] sm:$0xff] }
  0x1a   : > { %v1278_v2 = vld [vmem:[%s411_s25] sm:$0xff]  ;;  %v418_v3 = vpack.c.bf16 %v1276_v1, %v1276_v1 }
  0x1b   : > { %v420_v4 = vpack.c.bf16 %v1278_v2, %v1278_v2  ;;  %v1284_v5 = vld [vmem:[%s415_s23] sm:$0xff] }
  0x1c   : > { %v422_v6 = vpack.c.bf16 %v1284_v5, %v1284_v5 }
  0x1d LB: >> { %v1148_v7 = vmov 0.0   ;;  %s957_s19 = sshll.u32 %s1145_s14, 4  ;;  %vm1149_vm1 = vmmov 0   ;;  %s507_s26 = scalar_lea.vmem %s1407_s6, %s1145_s14  ;;  %vm642_vm2 = vcmask 64512   ;;  %vm704_vm3 = vcmask 1043456   ;;  %v748_v58 = vld [vmem:[#allocation2] sm:$0xff]  ;;  %s1145_s14 = sphi %s1289_s14, %s430_s14  }
  0x1e   : >> { %983 = vmatprep.subr.bf16.mxu1 %v1148_v7  ;;  %975 = vmatprep.subr.bf16.mxu0 %v1148_v7  ;;  %s502_s13 = scalar_lea.vmem %s1406_s5, %s957_s19  ;;  %s433_s22 = scalar_lea.vmem %s1404_s3, %s957_s19  ;;  %v939_v12 = vld [vmem:[%s507_s26] ss:$0 sm:$0xff] }
  0x1f   : >> { %987 = vmatprep.mubr.msk.bf16.mxu1 %vm1149_vm1, %v1148_v7  ;;  %979 = vmatprep.mubr.msk.bf16.mxu0 %vm1149_vm1, %v1148_v7  ;;  %v1067_v8 = vld [vmem:[%s502_s13 + $0x8] sm:$0xff]   ;;  %v1069_v10 = vld [vmem:[%s502_s13] sm:$0xff]   ;;  %s1306_s29 = scalar_lea.vmem %s1408_s7, %s957_s19  ;;  %s438_s16 = scalar_lea.vmem %s1405_s4, %s1145_s14 }
  0x20   : >> { %v1068_v9 = vld [vmem:[%s433_s22 + $0x8] sm:$0xff]   ;;  %984 = vmatpush3.bf16.msra.mxu1 %v1067_v8  ;;  %v1070_v11 = vld [vmem:[%s433_s22] sm:$0xff]   ;;  %s576_s24 = scalar_lea.vmem %s1409_s8, %s1145_s14  ;;  %s950_s25 = sshll.u32 %s1145_s14, 2 }
  0x21   : >> { %976 = vmatpush3.bf16.msra.mxu0 %v1068_v9  ;;  %985 = vmatprep.subr.bf16.mxu1 %v1148_v7  ;;  %v934_v17 = vld [vmem:[%s438_s16] ss:$0 sm:$0xff]  ;;  %v1071_v27 = vld [vmem:[%s1306_s29 + $0x8] sm:$0xff]   ;;  %s751_s26 = scalar_lea.vmem %s1410_s9, %s950_s25  ;;  %s430_s14 = sadd.s32 1, %s1145_s14  }
  0x22   : >> { %977 = vmatprep.subr.bf16.mxu0 %v1148_v7  ;;  %v1072_v28 = vld [vmem:[%s1306_s29] sm:$0xff]   ;;  %p427_p11 = scmp.ge.s32.totalorder %s430_s14, 4  }
  0x23   : >> { %v944_v40 = vld [vmem:[%s576_s24] ss:$0 sm:$0xff]  ;;  %s954_s16 = sshll.u32 (%p427_p11), %s1232_s21, 7  ;;  %s825_s14 = sshll.u32 (%p427_p11), %s403_s12, 4  ;;  %s826_s14 = int_to_ptr.vmem [resolvable:$true] %s825_s14 }
  0x24   : >> { %986 = vmatpush3.bf16.msra.mxu1 %v1069_v10  ;;  %v752_v47 = vld [vmem:[%s751_s26] sm:$0xf]  ;;  %s1359_s24 = scalar_lea.hbm (%p427_p11), %s1412_s11, %s954_s16  ;;  %s1422_s25 = sand.u32 (%p427_p11), 1, %s1133_s18  }
  0x25   : >> { %978 = vmatpush3.bf16.msra.mxu0 %v1070_v11  ;;  %999 = vmatprep.subr.bf16.mxu1 %v1148_v7  ;;  %v757_v48 = vsel %vm704_vm3, %v752_v47, 0  ;;  %s812_s19 = scalar_lea.sflag (%p427_p11), [#allocation4], %s1422_s25  ;;  %s1077_s23 = scalar_lea.vmem (%p427_p11), %s826_s14, 128 }
  0x26   : >> { %991 = vmatprep.subr.bf16.mxu0 %v1148_v7  ;;  %p1078_p12 = scmp.ne.s32.totalorder (%p427_p11), %s826_s14, %s1077_s23  ;;  %s1150_s21 = smov (%p427_p11), [#allocation3]  }
  0x27   : >> { %988 = vmatmul.mubr.msk.bf16.vlgmr.msra.gmra.mxu1 %vm423_vm0, %v420_v4  ;;  %s1081_s26 = sshll.u32 (%p427_p11), %s1150_s21, 4  ;;  %s1082_s26 = int_to_ptr.vmem [resolvable:$false] %s1081_s26 }
  0x28   : >> { %980 = vmatmul.mubr.msk.bf16.vlgmr.msra.gmra.mxu0 %vm423_vm0, %v418_v3  ;;  %1001 = vmatprep.mubr.msk.bf16.mxu1 %vm1149_vm1, %v1148_v7  ;;  %p1079_p13 = pnand (%p427_p11), %p1078_p12, %p1249_p5  ;;  %s1083_s13 = scalar_lea.vmem (%p427_p11), %s1082_s26, 256 }
  0x29   : >> { %995 = vmatprep.mubr.msk.bf16.mxu0 %vm1149_vm1, %v1148_v7  ;;  %992 = vmatpush3.bf16.msra.mxu0 %v1071_v27  ;;  %p1084_p1 = scmp.lt.s32.totalorder (%p427_p11), %s826_s14, %s1082_s26  ;;  %p1085_p2 = scmp.lt.s32.totalorder (%p427_p11), %s1083_s13, %s1077_s23 }
  0x2a   : >> { %993 = vmatprep.subr.bf16.mxu0 %v1148_v7  ;;  %p1080_p0 = pneg (%p427_p11), %p1079_p13 }
  0x2b   : > { %p1086_p3 = por (%p427_p11), %p1085_p2, %p1084_p1 }
  0x2d   : >> { %994 = vmatpush3.bf16.msra.mxu0 %v1072_v28  ;;  %p1087_p4 = pnand (%p427_p11), %p1086_p3, %p1080_p0 }
  0x2e   : >> { %1005 = vmatprep.subr.bf16.mxu0 %v1148_v7 }
  0x30   : >> { %996 = vmatmul.mubr.msk.bf16.vlgmr.msra.gmra.mxu0 %vm423_vm0, %v422_v6 }
  0x31   : >> { %1007 = vmatprep.mubr.msk.bf16.mxu0 %vm1149_vm1, %v1148_v7 }
  0xe7   : >> { %v564_v13 = vpop.f32.mrf.mxu1 }
  0xe8   : >> { %v565_v14 = vadd.f32 %v939_v12, %v564_v13  ;;  %v495_v15 = vpop.f32.mrf.mxu0 }
  0xe9   : >> { %v989_v16 = vpop.f32.mrf.mxu1  ;;  %v496_v22 = vadd.f32 %v934_v17, %v495_v15 }
  0xea   : >> { %v640_v18 = vpack.c.bf16 %v565_v14, %v565_v14  ;;  %v981_v19 = vpop.f32.mrf.mxu0 }
  0xeb   : >> { %v567_v20 = vpop.f32.mrf.mxu1  ;;  %v639_v26 = vpack.c.bf16 %v496_v22, %v496_v22 }
  0xec   : >> { %v647_v21 = vsel %vm642_vm2, %v640_v18, 0  ;;  %v498_v23 = vpop.f32.mrf.mxu0 }
  0xed   : >> { %v990_v24 = vpop.f32.mrf.mxu1  ;;  %1000 = vmatpush3.bf16.xpose.msra.mxu1 %v647_v21 }
  0xee   : >> { %v982_v25 = vpop.f32.mrf.mxu0  ;;  %1011 = vmatprep.subr.bf16.mxu1 %v1148_v7 }
  0xf0   : >> { %v633_v39 = vpop.f32.mrf.mxu0 }
  0xf1   : >> { %v634_v41 = vadd.f32 %v944_v40, %v633_v39 }
  0xf2   : >> { %v997_v42 = vpop.f32.mrf.mxu0 }
  0xf3   : >> { %v641_v43 = vpack.c.bf16 %v634_v41, %v634_v41 }
  0xf4   : >> { %1002 = vmatmul.mubr.msk.bf16.vlgmr.msra.gmra.mxu1 %vm642_vm2, %v639_v26  ;;  %v636_v44 = vpop.f32.mrf.mxu0 }
  0xf5   : >> { %1013 = vmatprep.mubr.msk.bf16.mxu1 %vm1149_vm1, %v1148_v7  ;;  %v706_v45 = vsel %vm704_vm3, %v641_v43, 0  ;;  %1012 = vmatpush3.bf16.msra.mxu1 %v757_v48  ;;  %v952_v7 = vld [vmem:[%s1411_s10] ss:$0 sm:$0xff] (%p427_p11) }
  0xf6   : >> { %v998_v46 = vpop.f32.mrf.mxu0  ;;  %1006 = vmatpush3.bf16.msra.mxu0 %v706_v45 }
 0x1b4   : >> { %v683_v29 = vpop.f32.mrf.mxu1 }
 0x1b5   : >> { %v689_v30 = vsel %vm642_vm2, %v683_v29, -inf }
 0x1b6   : >> { %690 = vmax.xlane.f32.xlu0 %v689_v30  ;;  %v1003_v31 = vpop.f32.mrf.mxu1 }
 0x1b8   : >> { %v686_v32 = vpop.f32.mrf.mxu1 }
 0x1ba   : >> { %v1004_v33 = vpop.f32.mrf.mxu1 }
 0x23f   : >> { %v691_v34 = vpop.xlane.xlu0 %690 }
 0x240   : >> { %v692_v35 = vsub.f32 %v683_v29, %v691_v34 }
 0x242   : >> { %v693_v36 = vmul.f32 1.442695, %v692_v35 }
 0x244   : >> { %1073 = vpow2.f32 %v693_v36 }
 0x251   : >> { %v1074_v37 = vpop.eup %1073 }
 0x252   : >> { %v695_v38 = vsel %vm642_vm2, %v1074_v37, 0.0 }
 0x253   : >> { %696 = vadd.xlane.f32.xlu0 %v695_v38 }
 0x2dc   : >> { %v697_v49 = vpop.xlane.xlu0 %696 }
 0x2dd   : >> { %1075 = vrcp.f32 %v697_v49 }
 0x2ea   : >> { %v1076_v50 = vpop.eup %1075 }
 0x2eb   : >> { %v699_v51 = vmul.f32 %v1076_v50, %v1074_v37 }
 0x2ed   : >> { %v700_v52 = vpack.c.bf16 %v699_v51, %v699_v51 }
 0x2ef   : >> { %1008 = vmatmul.mubr.msk.bf16.vlgmr.msra.gmra.mxu0 %vm642_vm2, %v700_v52 }
 0x3af   : >> { %v742_v53 = vpop.f32.mrf.mxu0 }
 0x3b0   : >> { %v749_v54 = vpack.c.bf16 %v742_v53, %v742_v53 }
 0x3b1   : >> { %v1009_v55 = vpop.f32.mrf.mxu0 }
 0x3b2   : >> { %1014 = vmatmul.mubr.msk.bf16.vlgmr.msra.gmra.mxu1 %vm642_vm2, %v749_v54 }
 0x3b3   : >> { %v745_v56 = vpop.f32.mrf.mxu0 }
 0x3b5   : >> { %v1010_v57 = vpop.f32.mrf.mxu0 }
 0x472   : >> { %v793_v59 = vpop.f32.mrf.mxu1 }
 0x473   : >> { %v799_v60 = vadd.f32 %v793_v59, %v748_v58 }
 0x474   : >> { %v1015_v61 = vpop.f32.mrf.mxu1 }
 0x475   : >> { %800 = vst.msk [vmem:[#allocation2] sm:$0xff] %vm423_vm0, %v799_v60 }
 0x476   : >> { %v796_v62 = vpop.f32.mrf.mxu1 }
 0x478   : >> { %v1016_v63 = vpop.f32.mrf.mxu1 }
 0x47a   : > { %429 = sbr.rel (!%p427_p11) target bundleno = 29 (0x1d), region = 119 }
 0x47c   : > { %v801_v0 = vld [vmem:[#allocation2] sm:$0xff] (%p427_p11) }
 0x47d   : > { %v809_v8 = vadd.f32 (%p427_p11), %v952_v7, %v801_v0 }
 0x47f   : > { %810 = vst.msk [vmem:[%s403_s12] sm:$0xff] %vm423_vm0, %v809_v8 }
 0x480   : > { %1090 = shalt.err (!%p1087_p4)
}
 0x481   : > { %s1091_s30 = scalar_lea.hbm %s1359_s24, 128  ;;  %s1095_s16 = scalar_lea.hbm %s1412_s11, 256 }
 0x482   : > { %p1092_p7 = scmp.ne.s32.totalorder %s1359_s24, %s1091_s30  ;;  %p1096_p10 = scmp.lt.s32.totalorder %s1359_s24, %s1412_s11 }
 0x483   : > { %p1097_p11 = scmp.lt.s32.totalorder %s1095_s16, %s1091_s30 }
 0x484   : > { %p1093_p8 = pnand %p1092_p7, %p1249_p5 }
 0x485   : > { %p1098_p12 = por %p1097_p11, %p1096_p10 }
 0x486   : > { %p1094_p9 = pneg %p1093_p8 }
 0x488   : > { %p1099_p13 = pnand %p1098_p12, %p1094_p9 }
 0x48a   : > { %1102 = shalt.err (!%p1099_p13)
}
 0x48b   : > { %1017 = dma.vmem_to_hbm [thread:$0]  (%p1249_p5), %s826_s14, 128, %s1359_s24, %s812_s19  }
 0x48c PF: > { %p1023_p0 = scmp.ge.s32.totalorder %s1141_s20, 2  ;;  %s837_s25 = sand.u32 1, %s1129_s17  }
 0x48d   : > { %s838_s23 = scalar_lea.sflag [#allocation4], %s837_s25 }
 0x48e   : > { %p1020_p1 = pnand %p1023_p0, %p1253_p6 }
 0x490   : > { %p1021_p2 = pneg %p1020_p1 }
 0x492   : > { %1124 = dma.done.wait (%p1021_p2), %s838_s23, 128  }
 0x493   : > { %1126 = vsyncadd (%p1021_p2), %s838_s23, 4294967168  ;;  %s1423_s20 = sld [smem:[#allocation7_spill]]  ;;  %s1426_s17 = smov %s1133_s18 }
 0x494   : > { %s1424_s21 = sld [smem:[#allocation6_spill]] }
 0x495   : > { %s1425_s19 = sld [smem:[#allocation8_spill]] }
 0x499   : > { %p21_p3 = scmp.ge.s32.totalorder %s1423_s20, 4  }
 0x49a   : > { %s1427_s18 = smov %s1424_s21 }
 0x49b   :  { %23 = sbr.rel (!%p21_p3) target bundleno = 3 (0x3), region = 130 }
 0x4a0   :  { %843 = vsyncpa [#allocation4], 1 }
 0x4a1   :  { %845 = vsyncpa [#allocation4 + $0x1], 1 }

</bundles_post_ra>
